<compile_context>
chip_gen: v6e
topology: v6e:2x2x1
jax: 0.10.0
libtpu: 0.0.40
codegen_flags: <defaults>
</compile_context>

<pallas_src>
import math

import jax
import jax.numpy as jnp
from jax import lax
from jax.experimental import pallas as pl
from jax.experimental.pallas import tpu as pltpu


def _round_up(v, m):
    return (v + m - 1) // m * m


def _vmem_capacity_bytes():
    try:
        cap = getattr(pltpu.get_tpu_info(), "vmem_capacity_bytes", None)
        if cap:
            return int(cap)
    except Exception:
        pass
    return 128 << 20  # v5e/v6e default; the 40 MiB data budget keeps v7x safe too


def _grouped_linear_kernel(x_ref, w_ref, b_ref, o_ref):
    """One (TN, K) x-tile @ (K, M) packed block-diagonal weight -> (TN, M) y-tile.

    x_ref: (TN, K)     activations in the native (N, G*I) layout
    w_ref: (1, K, M)   block-diagonal packed weights for this group-block
    b_ref: (1, 1, M)   packed bias (float32)
    o_ref: (TN, M)     lane-dense output tile -> single unmasked store
    """
    # In-kernel cast (VMEM only): enables the bf16 MXU path without an extra
    # HBM round trip on the activations.  No-op when dtypes already match.
    x = x_ref[...].astype(w_ref.dtype)
    acc = jnp.dot(x, w_ref[0], preferred_element_type=jnp.float32)
    o_ref[...] = (acc + b_ref[0]).astype(o_ref.dtype)


def plan_group_packing(groups, in_group, out_group, *, weight_itemsize=4,
                       max_full_fuse_bytes=2 << 20, max_block_bytes=16 << 20):
    """Return (gb, g_pad): consecutive groups fused per grid step and the
    (possibly zero-padded) group count used for packing.

    Preference order (avoids the old O(G^2) fuse-everything blow-up):
      1. I, O already 128-aligned -> gb = 1, no packing at all.
      2. Minimal lane-aligning gb (lcm-based) that divides G -> no padding.
      3. Fuse all G groups when the full (G*I, G*O) packed block is tiny
         (the module's typical config) -> feature block spans the whole axis.
      4. Pad G with zero groups up to a multiple of the minimal gb.
    """
    G, I, O = groups, in_group, out_group
    if I % 128 == 0 and O % 128 == 0:
        return 1, G
    need_i = 128 // math.gcd(I, 128)
    need_o = 128 // math.gcd(O, 128)
    gb = need_i * need_o // math.gcd(need_i, need_o)  # minimal aligned fusion
    if gb < G and G % gb == 0:
        return gb, G
    if (G * I) * (G * O) * weight_itemsize <= max_full_fuse_bytes:
        return G, G
    if (gb * I) * (gb * O) * weight_itemsize > max_block_bytes:
        # TODO(synk): masked-store fallback for group sizes whose minimal
        # lane-aligned fusion block no longer fits comfortably in VMEM.
        raise ValueError(
            f"GroupedLinear: packed block ({gb*I}, {gb*O}) too large for VMEM")
    return gb, _round_up(G, gb)


def pack_params(weight, bias, group_block, groups_padded=None, *, mxu_dtype=None):
    """One-time parameter packing (do at load time, not per forward pass).

    weight (G, I, O), bias (G, 1, O) ->
      w_packed (g_pad//gb, gb*I, gb*O): gb consecutive groups block-diagonalised
        so each grid step is one dense, lane-aligned MXU matmul (no masked
        partial stores, no tiny per-group dots).  Zero groups pad G -> g_pad.
      b_packed (g_pad//gb, 1, gb*O): bias concatenated to the output tile
        layout, kept in float32 so the bias add stays f32 on the VPU.
    """
    G, I, O = weight.shape
    gb = group_block
    g_pad = G if groups_padded is None else groups_padded
    assert g_pad % gb == 0 and g_pad >= G, (G, gb, g_pad)
    assert bias.shape == (G, 1, O), bias.shape
    w_dtype = jnp.dtype(mxu_dtype) if mxu_dtype is not None else weight.dtype
    if g_pad != G:  # zero groups: their output columns are sliced off later
        weight = jnp.pad(weight, ((0, g_pad - G), (0, 0), (0, 0)))
        bias = jnp.pad(bias, ((0, g_pad - G), (0, 0), (0, 0)))
    if gb == 1:
        w_packed = weight.astype(w_dtype)                         # (G, I, O)
    else:
        w = weight.astype(w_dtype).reshape(g_pad // gb, gb, I, O)
        eye = jnp.eye(gb, dtype=w_dtype)
        # packed[r, a*I + i, b*O + o] = (a == b) * W[r*gb + a, i, o]
        w_packed = jnp.einsum("ab,raio->raibo", eye, w).reshape(
            g_pad // gb, gb * I, gb * O)
    b_packed = bias.reshape(g_pad // gb, 1, gb * O).astype(jnp.float32)
    return w_packed, b_packed


def grouped_linear(x, w_packed, b_packed, *, block_n=1024, out_dtype=None,
                   vmem_budget_bytes=None, x_buffer_count=None):
    """y = GroupedLinear(x) using packed parameters.

    x: (N, G*I) in the module's native layout; returns (N, r*m).  No wrapper
    transposes, no astype pass, no batch-axis jnp.pad on the activations.
    """
    n, f = x.shape
    r, k, m = w_packed.shape              # r = g_pad//gb, k = gb*I, m = gb*O
    assert f == r * k, (x.shape, w_packed.shape)
    assert b_packed.shape == (r, 1, m), b_packed.shape
    out_dtype = jnp.dtype(out_dtype if out_dtype is not None else x.dtype)

    capacity = _vmem_capacity_bytes()
    # Headroom for Mosaic internal scratch: ~48 MiB usable on v7x (64 MiB
    # physical), ~112 MiB on v5e/v6e (128 MiB physical).
    limit_cap = max(32 << 20, capacity - (16 << 20))
    if vmem_budget_bytes is None:
        vmem_budget_bytes = min(40 << 20, limit_cap - (8 << 20))

    xb, ob = x.dtype.itemsize, out_dtype.itemsize
    wb, bb = w_packed.dtype.itemsize, b_packed.dtype.itemsize
    sublane = max(32 // xb, 32 // ob, 8)

    def step_bytes(tn):
        # double-buffered streams + the f32 matmul result before the final cast
        return 2 * (tn * k * xb + k * m * wb + m * bb + tn * m * ob) + tn * m * 4

    # Batch tile: as large as the VMEM budget allows, capped at block_n.
    tn = _round_up(min(block_n, _round_up(n, sublane)), sublane)
    while tn > sublane and step_bytes(tn) > vmem_budget_bytes:
        tn = max(sublane, _round_up(tn // 2, sublane))
    # v7x megacore: keep >= 2 grid steps when possible so both TensorCores get
    # work ("parallel" axes let Mosaic shard the grid); no-op on v5e/v6e.
    while r * pl.cdiv(n, tn) < 2 and tn > sublane:
        tn = max(sublane, _round_up(tn // 2, sublane))

    # Group-block axis outer, batch axis inner: the weight/bias block index is
    # constant along the inner axis -> fetched once per group-block.
    grid = (r, pl.cdiv(n, tn))
    vmem_limit = int(min(limit_cap, max(32 << 20, step_bytes(tn) + (8 << 20))))

    x_spec_kwargs = {}
    if x_buffer_count is not None:  # opt-in deeper pipelining (e.g. v5e)
        x_spec_kwargs["pipeline_mode"] = pl.Buffered(x_buffer_count)

    return pl.pallas_call(
        _grouped_linear_kernel,
        out_shape=jax.ShapeDtypeStruct((n, r * m), out_dtype),
        grid_spec=pltpu.PrefetchScalarGridSpec(
            num_scalar_prefetch=0,
            grid=grid,
            in_specs=[
                # x in its native (N, G*I) layout.  Rows past N in the last
                # tile are garbage reads whose (row-independent) results are
                # never stored, so no activation padding pass is needed.
                pl.BlockSpec((tn, k), lambda r_, n_: (n_, r_), **x_spec_kwargs),
                pl.BlockSpec((1, k, m), lambda r_, n_: (r_, 0, 0)),
                pl.BlockSpec((1, 1, m), lambda r_, n_: (r_, 0, 0)),
            ],
            out_specs=pl.BlockSpec((tn, m), lambda r_, n_: (n_, r_)),
        ),
        compiler_params=pltpu.CompilerParams(
            # Every output block is written exactly once -> both axes parallel.
            dimension_semantics=("parallel", "parallel"),
            vmem_limit_bytes=vmem_limit,
        ),
    )(x, w_packed, b_packed)


def grouped_linear_apply(x, weight, bias, *, block_n=1024, mxu_dtype=None,
                         out_dtype=None, max_full_fuse_bytes=2 << 20):
    """Drop-in forward: plan group fusion, pack params, run the kernel.

    mxu_dtype=jnp.bfloat16 is the recommended opt-in on v5e/v6e/v7x (bf16-native
    MXUs, halves weight HBM bytes); x stays in its own dtype in HBM and is cast
    inside the kernel, accumulation stays f32.  In a real model,
    plan_group_packing/pack_params run once at parameter-load time.
    """
    G, I, O = weight.shape
    w_itemsize = (jnp.dtype(mxu_dtype).itemsize if mxu_dtype is not None
                  else weight.dtype.itemsize)
    gb, g_pad = plan_group_packing(G, I, O, weight_itemsize=w_itemsize,
                                   max_full_fuse_bytes=max_full_fuse_bytes)
    w_p, b_p = pack_params(weight, bias, gb, g_pad, mxu_dtype=mxu_dtype)
    if g_pad != G:
        # Irregular-G fallback only: one extra pass to pad the feature axis.
        x = jnp.pad(x, ((0, 0), (0, (g_pad - G) * I)))
    y = grouped_linear(x, w_p, b_p, block_n=block_n, out_dtype=out_dtype)
    return y[:, :G * O] if g_pad != G else y


def init_params(key, in_group_size, out_group_size, groups, dtype=jnp.float32):
    """Deterministic init mirroring the PyTorch reset_parameters."""
    I, O, G = in_group_size, out_group_size, groups
    fan_in = I * O
    gain = math.sqrt(2.0 / (1.0 + 3.0))
    bound_w = math.sqrt(3.0) * gain / math.sqrt(fan_in)
    bound_b = 1.0 / math.sqrt(fan_in)
    kw, kb = jax.random.split(key)
    weight = jax.random.uniform(kw, (G, I, O), dtype, -bound_w, bound_w)
    bias = jax.random.uniform(kb, (G, 1, O), dtype, -bound_b, bound_b)
    return weight, bias


def _reference(x, weight, bias):
    """Pure-JAX reference with the same semantics as the PyTorch forward."""
    G, I, O = weight.shape
    n = x.shape[0]
    xg = jnp.transpose(x.reshape(n, G, I), (1, 0, 2))
    y = jnp.einsum("gni,gio->gno", xg, weight,
                   precision=lax.Precision.HIGHEST) + bias
    return jnp.transpose(y, (1, 0, 2)).reshape(n, G * O)


if __name__ == "__main__":
    key = jax.random.PRNGKey(0)

    # --- Test 1: typical small-group config (all groups fused, no padding) --
    I, O, G, N = 8, 8, 4, 8
    k1, k2, key = jax.random.split(key, 3)
    x = jax.random.normal(k1, (N, G * I), jnp.float32)
    weight, bias = init_params(k2, I, O, G)
    y = jax.block_until_ready(grouped_linear_apply(x, weight, bias))
    ref = _reference(x, weight, bias)
    assert y.shape == ref.shape and y.dtype == ref.dtype
    assert jnp.allclose(y, ref, atol=5e-3, rtol=2e-2)

    # --- Test 2: 128-aligned groups (gb=1), batch not a multiple of the tile -
    I2, O2, G2, N2 = 128, 128, 2, 200
    k3, k4, key = jax.random.split(key, 3)
    x2 = jax.random.normal(k3, (N2, G2 * I2), jnp.float32)
    w2, b2 = init_params(k4, I2, O2, G2)
    y2 = jax.block_until_ready(grouped_linear_apply(x2, w2, b2, block_n=128))
    ref2 = _reference(x2, w2, b2)
    assert y2.shape == ref2.shape
    assert jnp.allclose(y2, ref2, atol=5e-3, rtol=2e-2)

    # --- Test 3: bf16 MXU path (recommended on v6e/v7x); x stays f32 in HBM --
    y2b = jax.block_until_ready(
        grouped_linear_apply(x2, w2, b2, block_n=128, mxu_dtype=jnp.bfloat16))
    assert jnp.allclose(y2b, ref2, atol=2e-2, rtol=5e-2)

    # --- Test 4: irregular G -> zero-group padding path (forced) ------------
    I4, O4, G4, N4 = 8, 8, 6, 16
    k5, k6, key = jax.random.split(key, 3)
    x4 = jax.random.normal(k5, (N4, G4 * I4), jnp.float32)
    w4, b4 = init_params(k6, I4, O4, G4)
    gb4, gp4 = plan_group_packing(G4, I4, O4, max_full_fuse_bytes=0)
    assert gb4 == 16 and gp4 == 16, (gb4, gp4)
    y4 = jax.block_until_ready(
        grouped_linear_apply(x4, w4, b4, max_full_fuse_bytes=0))
    ref4 = _reference(x4, w4, b4)
    assert y4.shape == ref4.shape
    assert jnp.allclose(y4, ref4, atol=5e-3, rtol=2e-2)

    print("KERNEL_OK")
</pallas_src>

<mosaic_0001>
module attributes {stable_mosaic.version = 11 : i64} {
  func.func @_grouped_linear_kernel(%arg0: i32, %arg1: i32, %arg2: memref<8x32xf32, #tpu.memory_space<vmem>>, %arg3: memref<1x32x32xf32, #tpu.memory_space<vmem>>, %arg4: memref<1x1x32xf32, #tpu.memory_space<vmem>>, %arg5: memref<8x32xf32, #tpu.memory_space<vmem>>) attributes {dimension_semantics = [#tpu.dimension_semantics<parallel>, #tpu.dimension_semantics<parallel>], iteration_bounds = array<i64: 1, 1>, scalar_prefetch = 0 : i64, scratch_operands = 0 : i64, tpu.core_type = #tpu.core_type<tc>, window_params = [{transform_indices = @transform_0, window_bounds = array<i64: 8, 32>}, {transform_indices = @transform_1, window_bounds = array<i64: 1, 32, 32>}, {transform_indices = @transform_2, window_bounds = array<i64: 1, 1, 32>}, {transform_indices = @transform_3, window_bounds = array<i64: 8, 32>}]} {
    %c0 = arith.constant 0 : index
    %c0_0 = arith.constant 0 : index
    %0 = vector.load %arg2[%c0, %c0_0] : memref<8x32xf32, #tpu.memory_space<vmem>>, vector<8x32xf32>
    %c0_1 = arith.constant 0 : index
    %c0_2 = arith.constant 0 : index
    %c0_3 = arith.constant 0 : index
    %1 = vector.load %arg3[%c0_1, %c0_2, %c0_3] : memref<1x32x32xf32, #tpu.memory_space<vmem>>, vector<1x32x32xf32>
    %2 = vector.shape_cast %1 : vector<1x32x32xf32> to vector<32x32xf32>
    %cst = arith.constant dense<0.000000e+00> : vector<8x32xf32>
    %3 = tpu.matmul %0, %2, %cst {dimension_numbers = #tpu.dot_dimension_numbers<[1], [0], [0], [1], [0, 0, 1, 1], [], []>} : vector<8x32xf32>, vector<32x32xf32>, vector<8x32xf32> -> vector<8x32xf32>
    %c0_4 = arith.constant 0 : index
    %c0_5 = arith.constant 0 : index
    %c0_6 = arith.constant 0 : index
    %4 = vector.load %arg4[%c0_4, %c0_5, %c0_6] : memref<1x1x32xf32, #tpu.memory_space<vmem>>, vector<1x1x32xf32>
    %5 = vector.shape_cast %4 : vector<1x1x32xf32> to vector<1x32xf32>
    %6 = vector.broadcast %5 : vector<1x32xf32> to vector<8x32xf32>
    %7 = arith.addf %3, %6 : vector<8x32xf32>
    %c0_7 = arith.constant 0 : index
    %c0_8 = arith.constant 0 : index
    %8 = vector.load %arg5[%c0_7, %c0_8] : memref<8x32xf32, #tpu.memory_space<vmem>>, vector<8x32xf32>
    tpu.vector_store %arg5[%c0_7, %c0_8], %7 {strides = array<i32>} : memref<8x32xf32, #tpu.memory_space<vmem>>, vector<8x32xf32>,
    return
  }
  func.func @transform_0(%arg0: i32, %arg1: i32) -> (i32, i32) {
    %c0_i32 = arith.constant 0 : i32
    return %arg1, %arg0 : i32, i32
  }
  func.func @transform_1(%arg0: i32, %arg1: i32) -> (i32, i32, i32) {
    %c0_i32 = arith.constant 0 : i32
    %c0_i32_0 = arith.constant 0 : i32
    %c0_i32_1 = arith.constant 0 : i32
    return %arg0, %c0_i32, %c0_i32_0 : i32, i32, i32
  }
  func.func @transform_2(%arg0: i32, %arg1: i32) -> (i32, i32, i32) {
    %c0_i32 = arith.constant 0 : i32
    %c0_i32_0 = arith.constant 0 : i32
    %c0_i32_1 = arith.constant 0 : i32
    return %arg0, %c0_i32, %c0_i32_0 : i32, i32, i32
  }
  func.func @transform_3(%arg0: i32, %arg1: i32) -> (i32, i32) {
    %c0_i32 = arith.constant 0 : i32
    return %arg1, %arg0 : i32, i32
  }
}

</mosaic_0001>

<bundles_post_ra>
// kernel: tpu_custom_call.1
= control target key start
LH: loop header
LB: loop body
LE: loop exit
PB: predicated region body
PF: predicated region fallthrough
CT: control target
= control target key end

     0   :  { %8 = vsyncpa [#allocation3], 0  ;;  %s274_s0 = inlined_call_operand.hbm [shape: f32[8,32], index: 0, kind: input, shape index: {}]   ;;  %s275_s1 = inlined_call_operand.hbm [shape: f32[1,32,32], index: 1, kind: input, shape index: {}]   ;;  %s276_s2 = inlined_call_operand.vmem [shape: f32[1,1,32], index: 2, kind: input, shape index: {}]   ;;  %s277_s3 = inlined_call_operand.hbm [shape: f32[8,32], index: 3, kind: output, shape index: {}]  }
   0x1   :  { %9 = vsyncpa [#allocation6], 0 }
   0x2   :  { %10 = vsyncpa [#allocation4], 0  ;;  %s235_s12 = smov [#allocation2]   ;;  %s236_s14 = smov [#allocation5]  }
   0x3   :  { %s17_s13 = sshll.u32 %s235_s12, 4  ;;  %s26_s15 = sshll.u32 %s236_s14, 4  ;;  %s18_s13 = int_to_ptr.vmem [resolvable:$true] %s17_s13  ;;  %s27_s15 = int_to_ptr.vmem [resolvable:$true] %s26_s15 }
   0x4   :  { %s177_s16 = scalar_lea.vmem %s18_s13, 128  ;;  %p182_p1 = scmp.lt.s32.totalorder %s18_s13, %s18_s13 }
   0x5   :  { %p178_p0 = scmp.ne.s32.totalorder %s18_s13, %s177_s16  ;;  %p183_p2 = scmp.lt.s32.totalorder %s177_s16, %s177_s16 }
   0x7   :  { %p184_p3 = por %p183_p2, %p182_p1 }
   0x9   :  { %p185_p4 = pnand %p184_p3, %p178_p0 }
   0xb   :  { %188 = shalt.err (!%p185_p4)
}
   0xc   :  { %20 = dma.hbm_to_vmem [thread:$0]  %s274_s0, 128, %s18_s13, [#allocation3]  }
   0xd   :  { %s197_s19 = scalar_lea.vmem %s27_s15, 512  ;;  %p202_p6 = scmp.lt.s32.totalorder %s27_s15, %s27_s15 }
   0xe   :  { %p198_p5 = scmp.ne.s32.totalorder %s27_s15, %s197_s19  ;;  %p203_p7 = scmp.lt.s32.totalorder %s197_s19, %s197_s19 }
  0x10   :  { %p204_p8 = por %p203_p7, %p202_p6 }
  0x12   :  { %p205_p9 = pnand %p204_p8, %p198_p5 }
  0x14   :  { %208 = shalt.err (!%p205_p9)
}
  0x15   :  { %s237_s20 = smov 128   ;;  %s238_s21 = smov 8  }
  0x16   :  { %32 = dma.hbm_to_vmem [thread:$0]  %s275_s1, 512, %s27_s15, [#allocation6], %s237_s20, %s237_s20, %s238_s21  }
  0x17   :  { %229 = dma.done.wait [#allocation3], 128  }
  0x18   :  { %230 = vsyncadd [#allocation3], 4294967168 }
  0x19   :  { %231 = dma.done.wait [#allocation6], 512  }
  0x1a   :  { %232 = vsyncadd [#allocation6], 4294966784  ;;  %v239_v0 = vmov 0.0   ;;  %vm240_vm0 = vmmov 0   ;;  %v45_v1 = vld [vmem:[#allocation5 + $0x18] sm:$0xff]  ;;  %v44_v2 = vld [vmem:[#allocation5 + $0x10] sm:$0xff] }
  0x1b   :  { %151 = vmatprep.subr.mxu0 %v239_v0  ;;  %159 = vmatprep.mubr.msk.f32.mxu0 %vm240_vm0, %v239_v0  ;;  %v43_v3 = vld [vmem:[#allocation5 + $0x8] sm:$0xff]  ;;  %v42_v4 = vld [vmem:[#allocation5] sm:$0xff]  ;;  %v41_v5 = vld [vmem:[#allocation2] sm:$0xff]  ;;  %vm53_vm1 = vcmask 261120   ;;  %s241_s24 = smov [#allocation7]  }
  0x1c   :  { %152 = vmatpush3.msra.mxu0 %v45_v1  ;;  %v144_v6 = vld [vmem:[%s276_s2] ss:$0 sm:$0xff]  ;;  %s134_s25 = sshll.u32 %s241_s24, 4  ;;  %s135_s25 = int_to_ptr.vmem [resolvable:$true] %s134_s25 }
  0x1d   :  { %153 = vmatprep.subr.mxu0 %v239_v0  ;;  %s209_s26 = scalar_lea.vmem %s135_s25, 128  ;;  %p214_p11 = scmp.lt.s32.totalorder %s135_s25, %s135_s25 }
  0x1e   :  { %154 = vmatpush3.msra.mxu0 %v44_v2  ;;  %p210_p10 = scmp.ne.s32.totalorder %s135_s25, %s209_s26  ;;  %p215_p12 = scmp.lt.s32.totalorder %s209_s26, %s209_s26 }
  0x1f   :  { %155 = vmatprep.subr.mxu0 %v239_v0 }
  0x20   :  { %156 = vmatpush3.msra.mxu0 %v43_v3  ;;  %p216_p13 = por %p215_p12, %p214_p11 }
  0x21   :  { %157 = vmatprep.subr.mxu0 %v239_v0 }
  0x22   :  { %158 = vmatpush3.msra.mxu0 %v42_v4  ;;  %p217_p0 = pnand %p216_p13, %p210_p10 }
  0x23   :  { %160 = vmatmul.mubr.msk.f32.vlgmr.msra.gmra.mxu0 %vm53_vm1, %v41_v5 }
  0xe3   :  { %v123_v7 = vpop.f32.mrf.mxu0 }
  0xe4   :  { %v124_v8 = vadd.f32 %v144_v6, %v123_v7 }
  0xe5   :  { %v161_v9 = vpop.f32.mrf.mxu0 }
  0xe6   :  { %127 = vst.msk [vmem:[#allocation7] sm:$0xff] %vm53_vm1, %v124_v8 }
  0xe7   :  { %220 = shalt.err (!%p217_p0)
}
  0xe8   :  { %137 = dma.vmem_to_hbm [thread:$0]  %s135_s25, 128, %s277_s3, [#allocation4]  }
  0xe9   :  { %233 = dma.done.wait [#allocation4], 128  }
  0xea   :  { %234 = vsyncadd [#allocation4], 4294967168 }
  0xeb   :  { %141 = vsyncpa [#allocation3], 1 }
  0xec   :  { %142 = vsyncpa [#allocation6], 1 }
  0xed   :  { %143 = vsyncpa [#allocation4], 1 }

</bundles_post_ra>
